<compile_context>
chip_gen: v5e
topology: v5e:2x2
jax: 0.10.0
libtpu: 0.0.40
codegen_flags: <defaults>
</compile_context>

<pallas_src>
import functools

import jax
import jax.numpy as jnp
import numpy as np
from jax.experimental import pallas as pl
from jax.experimental.pallas import tpu as pltpu


# ----------------------------- Pallas kernel --------------------------------


def _encoder_lstm_kernel(x_ref, wih0_ref, wih_ref, whh_ref, b_ref,
                         wp_ref, bp_ref,
                         rnn_out_ref, enc_out_ref, lasth_ref, lastc_ref,
                         h_state, c_state, *, num_layers, hidden):
    """One grid step = one time step through all LSTM layers + projection.

    x_ref      : (1, B, E)  f32  embedded token for this time step
    wih0_ref   : (E, 4H)    f32  layer-0 input weights (transposed, gates fused)
    wih_ref    : (max(L-1,1), H, 4H) f32  input weights of layers 1..L-1
    whh_ref    : (L, H, 4H) f32  recurrent weights (transposed, gates fused)
    b_ref      : (L, 1, 4H) f32  pre-summed b_ih + b_hh per layer
    wp_ref     : (H, O)     f32  projection weight (transposed)
    bp_ref     : (1, O)     f32  projection bias
    outputs    : rnn_out (1,B,H), enc_out (1,B,O), last_h (L,B,H), last_c (L,B,H)
    scratch    : h_state, c_state (L, B, H) f32 — carried across time steps
    """
    H = hidden
    t = pl.program_id(0)

    @pl.when(t == 0)
    def _():
        h_state[...] = jnp.zeros_like(h_state)
        c_state[...] = jnp.zeros_like(c_state)

    layer_in = x_ref[0]                                             # (B, E)

    for l in range(num_layers):                                     # static unroll
        w_in = wih0_ref[...] if l == 0 else wih_ref[l - 1]          # (E|H, 4H)
        gates = (jnp.dot(layer_in, w_in, preferred_element_type=jnp.float32)
                 + jnp.dot(h_state[l], whh_ref[l],
                           preferred_element_type=jnp.float32)
                 + b_ref[l])                                        # (B, 4H) lane-dense
        i_g = jax.nn.sigmoid(gates[:, 0 * H:1 * H])
        f_g = jax.nn.sigmoid(gates[:, 1 * H:2 * H])
        g_g = jnp.tanh(gates[:, 2 * H:3 * H])
        o_g = jax.nn.sigmoid(gates[:, 3 * H:4 * H])
        c_new = f_g * c_state[l] + i_g * g_g
        h_new = o_g * jnp.tanh(c_new)
        h_state[l] = h_new
        c_state[l] = c_new
        layer_in = h_new                                            # feeds next layer

    rnn_out_ref[0] = layer_in
    enc_out_ref[0] = (jnp.dot(layer_in, wp_ref[...],
                              preferred_element_type=jnp.float32)
                      + bp_ref[...])

    @pl.when(t == pl.num_programs(0) - 1)
    def _():
        lasth_ref[...] = h_state[...]
        lastc_ref[...] = c_state[...]


# ----------------------------- host-side wrapper -----------------------------


def make_encoder_forward(hps):
    E = hps["embed_size"]
    H = hps["hidden_size"]
    O = hps["output_size"]
    L = hps["num_layers"]

    def _const_spec(shape):
        # Full-array block with a constant index_map -> stays resident in VMEM
        # across all grid (time) steps; DMA'd from HBM exactly once.
        return pl.BlockSpec(shape, lambda t, _s=shape: (0,) * len(_s))

    def forward(input_seq, params):
        T, B = input_seq.shape
        # Embedding gather done by XLA (review: don't ship the whole (V,E) table
        # into VMEM per step just to read a few rows).
        embedded = jnp.take(params["embed"], input_seq, axis=0)     # (T, B, E)

        kernel = functools.partial(_encoder_lstm_kernel,
                                   num_layers=L, hidden=H)

        grid_spec = pltpu.PrefetchScalarGridSpec(
            num_scalar_prefetch=0,
            grid=(T,),
            in_specs=[
                pl.BlockSpec((1, B, E), lambda t: (t, 0, 0)),       # per-step input
                _const_spec((E, 4 * H)),                            # w_ih layer 0
                _const_spec((max(L - 1, 1), H, 4 * H)),             # w_ih layers 1..
                _const_spec((L, H, 4 * H)),                         # w_hh
                _const_spec((L, 1, 4 * H)),                         # fused biases
                _const_spec((H, O)),                                # projection W
                _const_spec((1, O)),                                # projection b
            ],
            out_specs=(
                pl.BlockSpec((1, B, H), lambda t: (t, 0, 0)),       # rnn_outputs
                pl.BlockSpec((1, B, O), lambda t: (t, 0, 0)),       # encoder_outputs
                pl.BlockSpec((L, B, H), lambda t: (0, 0, 0)),       # last_h (resident)
                pl.BlockSpec((L, B, H), lambda t: (0, 0, 0)),       # last_c (resident)
            ),
            scratch_shapes=[
                pltpu.VMEM((L, B, H), jnp.float32),                 # h state carry
                pltpu.VMEM((L, B, H), jnp.float32),                 # c state carry
            ],
        )

        rnn_out, enc_out, last_h, last_c = pl.pallas_call(
            kernel,
            grid_spec=grid_spec,
            out_shape=(
                jax.ShapeDtypeStruct((T, B, H), jnp.float32),
                jax.ShapeDtypeStruct((T, B, O), jnp.float32),
                jax.ShapeDtypeStruct((L, B, H), jnp.float32),
                jax.ShapeDtypeStruct((L, B, H), jnp.float32),
            ),
            compiler_params=pltpu.CompilerParams(
                dimension_semantics=("arbitrary",)),                # time recurrence
        )(embedded,
          params["w_ih0_t"], params["w_ih_t"], params["w_hh_t"], params["bias"],
          params["w_proj_t"], params["b_proj"])

        return enc_out, rnn_out, (last_h, last_c)

    return jax.jit(forward)


def init_params(key, hps):
    V = hps["input_size"]
    E = hps["embed_size"]
    H = hps["hidden_size"]
    O = hps["output_size"]
    L = hps["num_layers"]
    ks = jax.random.split(key, 7)
    s = 0.1
    return dict(
        embed=jax.random.normal(ks[0], (V, E), jnp.float32) * s,
        w_ih0_t=jax.random.normal(ks[1], (E, 4 * H), jnp.float32) * s,
        w_ih_t=jax.random.normal(ks[2], (max(L - 1, 1), H, 4 * H), jnp.float32) * s,
        w_hh_t=jax.random.normal(ks[3], (L, H, 4 * H), jnp.float32) * s,
        # b_ih + b_hh pre-summed on the host (hoisted bias broadcast).
        bias=jax.random.normal(ks[4], (L, 1, 4 * H), jnp.float32) * s,
        w_proj_t=jax.random.normal(ks[5], (H, O), jnp.float32) * s,
        b_proj=jax.random.normal(ks[6], (1, O), jnp.float32) * s,
    )


# ----------------------------- pure-JAX reference ----------------------------


def forward_ref(input_seq, params, hps):
    H = hps["hidden_size"]
    L = hps["num_layers"]
    T, B = input_seq.shape
    embedded = params["embed"][input_seq]                           # (T, B, E)
    h = jnp.zeros((L, B, H), jnp.float32)
    c = jnp.zeros((L, B, H), jnp.float32)
    rnn_outs = []
    for t in range(T):
        layer_in = embedded[t]
        new_h, new_c = [], []
        for l in range(L):
            w_in = params["w_ih0_t"] if l == 0 else params["w_ih_t"][l - 1]
            gates = layer_in @ w_in + h[l] @ params["w_hh_t"][l] + params["bias"][l]
            i_g = jax.nn.sigmoid(gates[:, 0 * H:1 * H])
            f_g = jax.nn.sigmoid(gates[:, 1 * H:2 * H])
            g_g = jnp.tanh(gates[:, 2 * H:3 * H])
            o_g = jax.nn.sigmoid(gates[:, 3 * H:4 * H])
            cl = f_g * c[l] + i_g * g_g
            hl = o_g * jnp.tanh(cl)
            new_h.append(hl)
            new_c.append(cl)
            layer_in = hl
        h = jnp.stack(new_h)
        c = jnp.stack(new_c)
        rnn_outs.append(layer_in)
    rnn_out = jnp.stack(rnn_outs)                                   # (T, B, H)
    enc_out = rnn_out @ params["w_proj_t"] + params["b_proj"]       # (T, B, O)
    return enc_out, rnn_out, (h, c)


# ----------------------------------- main ------------------------------------


if __name__ == "__main__":
    # hps: input_size (vocab), embed_size, hidden_size, num_layers, output_size
    hps = dict(input_size=16, embed_size=32, hidden_size=32,
               num_layers=2, output_size=16)
    T, B = 8, 8                                   # B=8 fills f32 sublanes

    key = jax.random.PRNGKey(0)
    pkey, skey = jax.random.split(key)
    params = init_params(pkey, hps)
    input_seq = jax.random.randint(skey, (T, B), 0, hps["input_size"],
                                   dtype=jnp.int32)

    forward = make_encoder_forward(hps)
    enc_out, rnn_out, (last_h, last_c) = forward(input_seq, params)
    jax.block_until_ready(enc_out)
    jax.block_until_ready(rnn_out)
    jax.block_until_ready(last_h)
    jax.block_until_ready(last_c)

    # correctness check against pure-JAX reference
    enc_ref, rnn_ref, (h_ref, c_ref) = forward_ref(input_seq, params, hps)
    np.testing.assert_allclose(np.asarray(enc_out), np.asarray(enc_ref),
                               rtol=1e-4, atol=1e-4)
    np.testing.assert_allclose(np.asarray(rnn_out), np.asarray(rnn_ref),
                               rtol=1e-4, atol=1e-4)
    np.testing.assert_allclose(np.asarray(last_h), np.asarray(h_ref),
                               rtol=1e-4, atol=1e-4)
    np.testing.assert_allclose(np.asarray(last_c), np.asarray(c_ref),
                               rtol=1e-4, atol=1e-4)

    print("KERNEL_OK")
</pallas_src>

<mosaic_0001>
module attributes {stable_mosaic.version = 11 : i64} {
  func.func @_encoder_lstm_kernel(%arg0: i32, %arg1: memref<1x8x32xf32, #tpu.memory_space<vmem>>, %arg2: memref<32x128xf32, #tpu.memory_space<vmem>>, %arg3: memref<1x32x128xf32, #tpu.memory_space<vmem>>, %arg4: memref<2x32x128xf32, #tpu.memory_space<vmem>>, %arg5: memref<2x1x128xf32, #tpu.memory_space<vmem>>, %arg6: memref<32x16xf32, #tpu.memory_space<vmem>>, %arg7: memref<1x16xf32, #tpu.memory_space<vmem>>, %arg8: memref<1x8x32xf32, #tpu.memory_space<vmem>>, %arg9: memref<1x8x16xf32, #tpu.memory_space<vmem>>, %arg10: memref<2x8x32xf32, #tpu.memory_space<vmem>>, %arg11: memref<2x8x32xf32, #tpu.memory_space<vmem>>, %arg12: memref<2x8x32xf32, #tpu.memory_space<vmem>>, %arg13: memref<2x8x32xf32, #tpu.memory_space<vmem>>) attributes {dimension_semantics = [#tpu.dimension_semantics<arbitrary>], iteration_bounds = array<i64: 8>, scalar_prefetch = 0 : i64, scratch_operands = 2 : i64, tpu.core_type = #tpu.core_type<tc>, window_params = [{transform_indices = @transform_0, window_bounds = array<i64: 1, 8, 32>}, {pipeline_mode = #tpu.pipeline_mode<synchronous>, transform_indices = @transform_1, window_bounds = array<i64: 32, 128>}, {pipeline_mode = #tpu.pipeline_mode<synchronous>, transform_indices = @transform_2, window_bounds = array<i64: 1, 32, 128>}, {pipeline_mode = #tpu.pipeline_mode<synchronous>, transform_indices = @transform_3, window_bounds = array<i64: 2, 32, 128>}, {pipeline_mode = #tpu.pipeline_mode<synchronous>, transform_indices = @transform_4, window_bounds = array<i64: 2, 1, 128>}, {pipeline_mode = #tpu.pipeline_mode<synchronous>, transform_indices = @transform_5, window_bounds = array<i64: 32, 16>}, {pipeline_mode = #tpu.pipeline_mode<synchronous>, transform_indices = @transform_6, window_bounds = array<i64: 1, 16>}, {transform_indices = @transform_7, window_bounds = array<i64: 1, 8, 32>}, {transform_indices = @transform_8, window_bounds = array<i64: 1, 8, 16>}, {pipeline_mode = #tpu.pipeline_mode<synchronous>, transform_indices = @transform_9, window_bounds = array<i64: 2, 8, 32>}, {pipeline_mode = #tpu.pipeline_mode<synchronous>, transform_indices = @transform_10, window_bounds = array<i64: 2, 8, 32>}]} {
    %c0_i32 = arith.constant 0 : i32
    %0 = arith.cmpi eq, %arg0, %c0_i32 : i32
    %1 = arith.extui %0 : i1 to i32
    %c0_i32_0 = arith.constant 0 : i32
    %2 = arith.cmpi ne, %1, %c0_i32_0 : i32
    scf.if %2 {
      %cst_64 = arith.constant 0.000000e+00 : f32
      %110 = vector.broadcast %cst_64 : f32 to vector<2x8x32xf32>
      %c0_65 = arith.constant 0 : index
      %c0_66 = arith.constant 0 : index
      %c0_67 = arith.constant 0 : index
      %111 = vector.load %arg12[%c0_65, %c0_66, %c0_67] : memref<2x8x32xf32, #tpu.memory_space<vmem>>, vector<2x8x32xf32>
      tpu.vector_store %arg12[%c0_65, %c0_66, %c0_67], %110 {strides = array<i32>} : memref<2x8x32xf32, #tpu.memory_space<vmem>>, vector<2x8x32xf32>,
      %cst_68 = arith.constant 0.000000e+00 : f32
      %112 = vector.broadcast %cst_68 : f32 to vector<2x8x32xf32>
      %c0_69 = arith.constant 0 : index
      %c0_70 = arith.constant 0 : index
      %c0_71 = arith.constant 0 : index
      %113 = vector.load %arg13[%c0_69, %c0_70, %c0_71] : memref<2x8x32xf32, #tpu.memory_space<vmem>>, vector<2x8x32xf32>
      tpu.vector_store %arg13[%c0_69, %c0_70, %c0_71], %112 {strides = array<i32>} : memref<2x8x32xf32, #tpu.memory_space<vmem>>, vector<2x8x32xf32>,
    } else {
    }
    %c0 = arith.constant 0 : index
    %c0_1 = arith.constant 0 : index
    %c0_2 = arith.constant 0 : index
    %3 = vector.load %arg1[%c0, %c0_1, %c0_2] : memref<1x8x32xf32, #tpu.memory_space<vmem>>, vector<1x8x32xf32>
    %4 = vector.shape_cast %3 : vector<1x8x32xf32> to vector<8x32xf32>
    %c0_3 = arith.constant 0 : index
    %c0_4 = arith.constant 0 : index
    %5 = vector.load %arg2[%c0_3, %c0_4] : memref<32x128xf32, #tpu.memory_space<vmem>>, vector<32x128xf32>
    %cst = arith.constant dense<0.000000e+00> : vector<8x128xf32>
    %6 = tpu.matmul %4, %5, %cst {dimension_numbers = #tpu.dot_dimension_numbers<[1], [0], [0], [1], [0, 0, 1, 1], [], []>} : vector<8x32xf32>, vector<32x128xf32>, vector<8x128xf32> -> vector<8x128xf32>
    %c0_5 = arith.constant 0 : index
    %c0_6 = arith.constant 0 : index
    %c0_7 = arith.constant 0 : index
    %7 = vector.load %arg12[%c0_5, %c0_6, %c0_7] : memref<2x8x32xf32, #tpu.memory_space<vmem>>, vector<1x8x32xf32>
    %8 = vector.shape_cast %7 : vector<1x8x32xf32> to vector<8x32xf32>
    %c0_8 = arith.constant 0 : index
    %c0_9 = arith.constant 0 : index
    %c0_10 = arith.constant 0 : index
    %9 = vector.load %arg4[%c0_8, %c0_9, %c0_10] : memref<2x32x128xf32, #tpu.memory_space<vmem>>, vector<1x32x128xf32>
    %10 = vector.shape_cast %9 : vector<1x32x128xf32> to vector<32x128xf32>
    %cst_11 = arith.constant dense<0.000000e+00> : vector<8x128xf32>
    %11 = tpu.matmul %8, %10, %cst_11 {dimension_numbers = #tpu.dot_dimension_numbers<[1], [0], [0], [1], [0, 0, 1, 1], [], []>} : vector<8x32xf32>, vector<32x128xf32>, vector<8x128xf32> -> vector<8x128xf32>
    %12 = arith.addf %6, %11 : vector<8x128xf32>
    %c0_12 = arith.constant 0 : index
    %c0_13 = arith.constant 0 : index
    %c0_14 = arith.constant 0 : index
    %13 = vector.load %arg5[%c0_12, %c0_13, %c0_14] : memref<2x1x128xf32, #tpu.memory_space<vmem>>, vector<1x1x128xf32>
    %14 = vector.shape_cast %13 : vector<1x1x128xf32> to vector<1x128xf32>
    %15 = vector.broadcast %14 : vector<1x128xf32> to vector<8x128xf32>
    %16 = arith.addf %12, %15 : vector<8x128xf32>
    %17 = vector.extract_strided_slice %16 {offsets = [0, 0], sizes = [8, 32], strides = [1, 1]} : vector<8x128xf32> to vector<8x32xf32>
    %18 = arith.negf %17 : vector<8x32xf32>
    %19 = math.exp %18 : vector<8x32xf32>
    %cst_15 = arith.constant 1.000000e+00 : f32
    %20 = vector.broadcast %cst_15 : f32 to vector<8x32xf32>
    %21 = arith.addf %20, %19 : vector<8x32xf32>
    %22 = arith.divf %20, %21 : vector<8x32xf32>
    %23 = vector.extract_strided_slice %16 {offsets = [0, 32], sizes = [8, 32], strides = [1, 1]} : vector<8x128xf32> to vector<8x32xf32>
    %24 = arith.negf %23 : vector<8x32xf32>
    %25 = math.exp %24 : vector<8x32xf32>
    %cst_16 = arith.constant 1.000000e+00 : f32
    %26 = vector.broadcast %cst_16 : f32 to vector<8x32xf32>
    %27 = arith.addf %26, %25 : vector<8x32xf32>
    %28 = arith.divf %26, %27 : vector<8x32xf32>
    %29 = vector.extract_strided_slice %16 {offsets = [0, 64], sizes = [8, 32], strides = [1, 1]} : vector<8x128xf32> to vector<8x32xf32>
    %30 = math.tanh %29 : vector<8x32xf32>
    %31 = vector.extract_strided_slice %16 {offsets = [0, 96], sizes = [8, 32], strides = [1, 1]} : vector<8x128xf32> to vector<8x32xf32>
    %32 = arith.negf %31 : vector<8x32xf32>
    %33 = math.exp %32 : vector<8x32xf32>
    %cst_17 = arith.constant 1.000000e+00 : f32
    %34 = vector.broadcast %cst_17 : f32 to vector<8x32xf32>
    %35 = arith.addf %34, %33 : vector<8x32xf32>
    %36 = arith.divf %34, %35 : vector<8x32xf32>
    %c0_18 = arith.constant 0 : index
    %c0_19 = arith.constant 0 : index
    %c0_20 = arith.constant 0 : index
    %37 = vector.load %arg13[%c0_18, %c0_19, %c0_20] : memref<2x8x32xf32, #tpu.memory_space<vmem>>, vector<1x8x32xf32>
    %38 = vector.shape_cast %37 : vector<1x8x32xf32> to vector<8x32xf32>
    %39 = arith.mulf %28, %38 : vector<8x32xf32>
    %40 = arith.mulf %22, %30 : vector<8x32xf32>
    %41 = arith.addf %39, %40 : vector<8x32xf32>
    %42 = math.tanh %41 : vector<8x32xf32>
    %43 = arith.mulf %36, %42 : vector<8x32xf32>
    %c0_21 = arith.constant 0 : index
    %c0_22 = arith.constant 0 : index
    %c0_23 = arith.constant 0 : index
    %44 = vector.load %arg12[%c0_21, %c0_22, %c0_23] : memref<2x8x32xf32, #tpu.memory_space<vmem>>, vector<1x8x32xf32>
    %45 = vector.shape_cast %44 : vector<1x8x32xf32> to vector<8x32xf32>
    %46 = vector.shape_cast %43 : vector<8x32xf32> to vector<1x8x32xf32>
    tpu.vector_store %arg12[%c0_21, %c0_22, %c0_23], %46 {strides = array<i32>} : memref<2x8x32xf32, #tpu.memory_space<vmem>>, vector<1x8x32xf32>,
    %c0_24 = arith.constant 0 : index
    %c0_25 = arith.constant 0 : index
    %c0_26 = arith.constant 0 : index
    %47 = vector.load %arg13[%c0_24, %c0_25, %c0_26] : memref<2x8x32xf32, #tpu.memory_space<vmem>>, vector<1x8x32xf32>
    %48 = vector.shape_cast %47 : vector<1x8x32xf32> to vector<8x32xf32>
    %49 = vector.shape_cast %41 : vector<8x32xf32> to vector<1x8x32xf32>
    tpu.vector_store %arg13[%c0_24, %c0_25, %c0_26], %49 {strides = array<i32>} : memref<2x8x32xf32, #tpu.memory_space<vmem>>, vector<1x8x32xf32>,
    %c0_27 = arith.constant 0 : index
    %c0_28 = arith.constant 0 : index
    %c0_29 = arith.constant 0 : index
    %50 = vector.load %arg3[%c0_27, %c0_28, %c0_29] : memref<1x32x128xf32, #tpu.memory_space<vmem>>, vector<1x32x128xf32>
    %51 = vector.shape_cast %50 : vector<1x32x128xf32> to vector<32x128xf32>
    %cst_30 = arith.constant dense<0.000000e+00> : vector<8x128xf32>
    %52 = tpu.matmul %43, %51, %cst_30 {dimension_numbers = #tpu.dot_dimension_numbers<[1], [0], [0], [1], [0, 0, 1, 1], [], []>} : vector<8x32xf32>, vector<32x128xf32>, vector<8x128xf32> -> vector<8x128xf32>
    %c1 = arith.constant 1 : index
    %c0_31 = arith.constant 0 : index
    %c0_32 = arith.constant 0 : index
    %53 = vector.load %arg12[%c1, %c0_31, %c0_32] : memref<2x8x32xf32, #tpu.memory_space<vmem>>, vector<1x8x32xf32>
    %54 = vector.shape_cast %53 : vector<1x8x32xf32> to vector<8x32xf32>
    %c1_33 = arith.constant 1 : index
    %c0_34 = arith.constant 0 : index
    %c0_35 = arith.constant 0 : index
    %55 = vector.load %arg4[%c1_33, %c0_34, %c0_35] : memref<2x32x128xf32, #tpu.memory_space<vmem>>, vector<1x32x128xf32>
    %56 = vector.shape_cast %55 : vector<1x32x128xf32> to vector<32x128xf32>
    %cst_36 = arith.constant dense<0.000000e+00> : vector<8x128xf32>
    %57 = tpu.matmul %54, %56, %cst_36 {dimension_numbers = #tpu.dot_dimension_numbers<[1], [0], [0], [1], [0, 0, 1, 1], [], []>} : vector<8x32xf32>, vector<32x128xf32>, vector<8x128xf32> -> vector<8x128xf32>
    %58 = arith.addf %52, %57 : vector<8x128xf32>
    %c1_37 = arith.constant 1 : index
    %c0_38 = arith.constant 0 : index
    %c0_39 = arith.constant 0 : index
    %59 = vector.load %arg5[%c1_37, %c0_38, %c0_39] : memref<2x1x128xf32, #tpu.memory_space<vmem>>, vector<1x1x128xf32>
    %60 = vector.shape_cast %59 : vector<1x1x128xf32> to vector<1x128xf32>
    %61 = vector.broadcast %60 : vector<1x128xf32> to vector<8x128xf32>
    %62 = arith.addf %58, %61 : vector<8x128xf32>
    %63 = vector.extract_strided_slice %62 {offsets = [0, 0], sizes = [8, 32], strides = [1, 1]} : vector<8x128xf32> to vector<8x32xf32>
    %64 = arith.negf %63 : vector<8x32xf32>
    %65 = math.exp %64 : vector<8x32xf32>
    %cst_40 = arith.constant 1.000000e+00 : f32
    %66 = vector.broadcast %cst_40 : f32 to vector<8x32xf32>
    %67 = arith.addf %66, %65 : vector<8x32xf32>
    %68 = arith.divf %66, %67 : vector<8x32xf32>
    %69 = vector.extract_strided_slice %62 {offsets = [0, 32], sizes = [8, 32], strides = [1, 1]} : vector<8x128xf32> to vector<8x32xf32>
    %70 = arith.negf %69 : vector<8x32xf32>
    %71 = math.exp %70 : vector<8x32xf32>
    %cst_41 = arith.constant 1.000000e+00 : f32
    %72 = vector.broadcast %cst_41 : f32 to vector<8x32xf32>
    %73 = arith.addf %72, %71 : vector<8x32xf32>
    %74 = arith.divf %72, %73 : vector<8x32xf32>
    %75 = vector.extract_strided_slice %62 {offsets = [0, 64], sizes = [8, 32], strides = [1, 1]} : vector<8x128xf32> to vector<8x32xf32>
    %76 = math.tanh %75 : vector<8x32xf32>
    %77 = vector.extract_strided_slice %62 {offsets = [0, 96], sizes = [8, 32], strides = [1, 1]} : vector<8x128xf32> to vector<8x32xf32>
    %78 = arith.negf %77 : vector<8x32xf32>
    %79 = math.exp %78 : vector<8x32xf32>
    %cst_42 = arith.constant 1.000000e+00 : f32
    %80 = vector.broadcast %cst_42 : f32 to vector<8x32xf32>
    %81 = arith.addf %80, %79 : vector<8x32xf32>
    %82 = arith.divf %80, %81 : vector<8x32xf32>
    %c1_43 = arith.constant 1 : index
    %c0_44 = arith.constant 0 : index
    %c0_45 = arith.constant 0 : index
    %83 = vector.load %arg13[%c1_43, %c0_44, %c0_45] : memref<2x8x32xf32, #tpu.memory_space<vmem>>, vector<1x8x32xf32>
    %84 = vector.shape_cast %83 : vector<1x8x32xf32> to vector<8x32xf32>
    %85 = arith.mulf %74, %84 : vector<8x32xf32>
    %86 = arith.mulf %68, %76 : vector<8x32xf32>
    %87 = arith.addf %85, %86 : vector<8x32xf32>
    %88 = math.tanh %87 : vector<8x32xf32>
    %89 = arith.mulf %82, %88 : vector<8x32xf32>
    %c1_46 = arith.constant 1 : index
    %c0_47 = arith.constant 0 : index
    %c0_48 = arith.constant 0 : index
    %90 = vector.load %arg12[%c1_46, %c0_47, %c0_48] : memref<2x8x32xf32, #tpu.memory_space<vmem>>, vector<1x8x32xf32>
    %91 = vector.shape_cast %90 : vector<1x8x32xf32> to vector<8x32xf32>
    %92 = vector.shape_cast %89 : vector<8x32xf32> to vector<1x8x32xf32>
    tpu.vector_store %arg12[%c1_46, %c0_47, %c0_48], %92 {strides = array<i32>} : memref<2x8x32xf32, #tpu.memory_space<vmem>>, vector<1x8x32xf32>,
    %c1_49 = arith.constant 1 : index
    %c0_50 = arith.constant 0 : index
    %c0_51 = arith.constant 0 : index
    %93 = vector.load %arg13[%c1_49, %c0_50, %c0_51] : memref<2x8x32xf32, #tpu.memory_space<vmem>>, vector<1x8x32xf32>
    %94 = vector.shape_cast %93 : vector<1x8x32xf32> to vector<8x32xf32>
    %95 = vector.shape_cast %87 : vector<8x32xf32> to vector<1x8x32xf32>
    tpu.vector_store %arg13[%c1_49, %c0_50, %c0_51], %95 {strides = array<i32>} : memref<2x8x32xf32, #tpu.memory_space<vmem>>, vector<1x8x32xf32>,
    %c0_52 = arith.constant 0 : index
    %c0_53 = arith.constant 0 : index
    %c0_54 = arith.constant 0 : index
    %96 = vector.load %arg8[%c0_52, %c0_53, %c0_54] : memref<1x8x32xf32, #tpu.memory_space<vmem>>, vector<1x8x32xf32>
    %97 = vector.shape_cast %96 : vector<1x8x32xf32> to vector<8x32xf32>
    %98 = vector.shape_cast %89 : vector<8x32xf32> to vector<1x8x32xf32>
    tpu.vector_store %arg8[%c0_52, %c0_53, %c0_54], %98 {strides = array<i32>} : memref<1x8x32xf32, #tpu.memory_space<vmem>>, vector<1x8x32xf32>,
    %c0_55 = arith.constant 0 : index
    %c0_56 = arith.constant 0 : index
    %99 = vector.load %arg6[%c0_55, %c0_56] : memref<32x16xf32, #tpu.memory_space<vmem>>, vector<32x16xf32>
    %cst_57 = arith.constant dense<0.000000e+00> : vector<8x16xf32>
    %100 = tpu.matmul %89, %99, %cst_57 {dimension_numbers = #tpu.dot_dimension_numbers<[1], [0], [0], [1], [0, 0, 1, 1], [], []>} : vector<8x32xf32>, vector<32x16xf32>, vector<8x16xf32> -> vector<8x16xf32>
    %c0_58 = arith.constant 0 : index
    %c0_59 = arith.constant 0 : index
    %101 = vector.load %arg7[%c0_58, %c0_59] : memref<1x16xf32, #tpu.memory_space<vmem>>, vector<1x16xf32>
    %102 = vector.broadcast %101 : vector<1x16xf32> to vector<8x16xf32>
    %103 = arith.addf %100, %102 : vector<8x16xf32>
    %c0_60 = arith.constant 0 : index
    %c0_61 = arith.constant 0 : index
    %c0_62 = arith.constant 0 : index
    %104 = vector.load %arg9[%c0_60, %c0_61, %c0_62] : memref<1x8x16xf32, #tpu.memory_space<vmem>>, vector<1x8x16xf32>
    %105 = vector.shape_cast %104 : vector<1x8x16xf32> to vector<8x16xf32>
    %106 = vector.shape_cast %103 : vector<8x16xf32> to vector<1x8x16xf32>
    tpu.vector_store %arg9[%c0_60, %c0_61, %c0_62], %106 {strides = array<i32>} : memref<1x8x16xf32, #tpu.memory_space<vmem>>, vector<1x8x16xf32>,
    %c7_i32 = arith.constant 7 : i32
    %107 = arith.cmpi eq, %arg0, %c7_i32 : i32
    %108 = arith.extui %107 : i1 to i32
    %c0_i32_63 = arith.constant 0 : i32
    %109 = arith.cmpi ne, %108, %c0_i32_63 : i32
    scf.if %109 {
      %c0_64 = arith.constant 0 : index
      %c0_65 = arith.constant 0 : index
      %c0_66 = arith.constant 0 : index
      %110 = vector.load %arg12[%c0_64, %c0_65, %c0_66] : memref<2x8x32xf32, #tpu.memory_space<vmem>>, vector<2x8x32xf32>
      %c0_67 = arith.constant 0 : index
      %c0_68 = arith.constant 0 : index
      %c0_69 = arith.constant 0 : index
      %111 = vector.load %arg10[%c0_67, %c0_68, %c0_69] : memref<2x8x32xf32, #tpu.memory_space<vmem>>, vector<2x8x32xf32>
      tpu.vector_store %arg10[%c0_67, %c0_68, %c0_69], %110 {strides = array<i32>} : memref<2x8x32xf32, #tpu.memory_space<vmem>>, vector<2x8x32xf32>,
      %c0_70 = arith.constant 0 : index
      %c0_71 = arith.constant 0 : index
      %c0_72 = arith.constant 0 : index
      %112 = vector.load %arg13[%c0_70, %c0_71, %c0_72] : memref<2x8x32xf32, #tpu.memory_space<vmem>>, vector<2x8x32xf32>
      %c0_73 = arith.constant 0 : index
      %c0_74 = arith.constant 0 : index
      %c0_75 = arith.constant 0 : index
      %113 = vector.load %arg11[%c0_73, %c0_74, %c0_75] : memref<2x8x32xf32, #tpu.memory_space<vmem>>, vector<2x8x32xf32>
      tpu.vector_store %arg11[%c0_73, %c0_74, %c0_75], %112 {strides = array<i32>} : memref<2x8x32xf32, #tpu.memory_space<vmem>>, vector<2x8x32xf32>,
    } else {
    }
    return
  }
  func.func @transform_0(%arg0: i32) -> (i32, i32, i32) {
    %c0_i32 = arith.constant 0 : i32
    %c0_i32_0 = arith.constant 0 : i32
    %c0_i32_1 = arith.constant 0 : i32
    return %arg0, %c0_i32, %c0_i32_0 : i32, i32, i32
  }
  func.func @transform_1(%arg0: i32) -> (i32, i32) {
    %c0_i32 = arith.constant 0 : i32
    %c0_i32_0 = arith.constant 0 : i32
    %c0_i32_1 = arith.constant 0 : i32
    return %c0_i32, %c0_i32_0 : i32, i32
  }
  func.func @transform_2(%arg0: i32) -> (i32, i32, i32) {
    %c0_i32 = arith.constant 0 : i32
    %c0_i32_0 = arith.constant 0 : i32
    %c0_i32_1 = arith.constant 0 : i32
    %c0_i32_2 = arith.constant 0 : i32
    return %c0_i32, %c0_i32_0, %c0_i32_1 : i32, i32, i32
  }
  func.func @transform_3(%arg0: i32) -> (i32, i32, i32) {
    %c0_i32 = arith.constant 0 : i32
    %c0_i32_0 = arith.constant 0 : i32
    %c0_i32_1 = arith.constant 0 : i32
    %c0_i32_2 = arith.constant 0 : i32
    return %c0_i32, %c0_i32_0, %c0_i32_1 : i32, i32, i32
  }
  func.func @transform_4(%arg0: i32) -> (i32, i32, i32) {
    %c0_i32 = arith.constant 0 : i32
    %c0_i32_0 = arith.constant 0 : i32
    %c0_i32_1 = arith.constant 0 : i32
    %c0_i32_2 = arith.constant 0 : i32
    return %c0_i32, %c0_i32_0, %c0_i32_1 : i32, i32, i32
  }
  func.func @transform_5(%arg0: i32) -> (i32, i32) {
    %c0_i32 = arith.constant 0 : i32
    %c0_i32_0 = arith.constant 0 : i32
    %c0_i32_1 = arith.constant 0 : i32
    return %c0_i32, %c0_i32_0 : i32, i32
  }
  func.func @transform_6(%arg0: i32) -> (i32, i32) {
    %c0_i32 = arith.constant 0 : i32
    %c0_i32_0 = arith.constant 0 : i32
    %c0_i32_1 = arith.constant 0 : i32
    return %c0_i32, %c0_i32_0 : i32, i32
  }
  func.func @transform_7(%arg0: i32) -> (i32, i32, i32) {
    %c0_i32 = arith.constant 0 : i32
    %c0_i32_0 = arith.constant 0 : i32
    %c0_i32_1 = arith.constant 0 : i32
    return %arg0, %c0_i32, %c0_i32_0 : i32, i32, i32
  }
  func.func @transform_8(%arg0: i32) -> (i32, i32, i32) {
    %c0_i32 = arith.constant 0 : i32
    %c0_i32_0 = arith.constant 0 : i32
    %c0_i32_1 = arith.constant 0 : i32
    return %arg0, %c0_i32, %c0_i32_0 : i32, i32, i32
  }
  func.func @transform_9(%arg0: i32) -> (i32, i32, i32) {
    %c0_i32 = arith.constant 0 : i32
    %c0_i32_0 = arith.constant 0 : i32
    %c0_i32_1 = arith.constant 0 : i32
    %c0_i32_2 = arith.constant 0 : i32
    return %c0_i32, %c0_i32_0, %c0_i32_1 : i32, i32, i32
  }
  func.func @transform_10(%arg0: i32) -> (i32, i32, i32) {
    %c0_i32 = arith.constant 0 : i32
    %c0_i32_0 = arith.constant 0 : i32
    %c0_i32_1 = arith.constant 0 : i32
    %c0_i32_2 = arith.constant 0 : i32
    return %c0_i32, %c0_i32_0, %c0_i32_1 : i32, i32, i32
  }
}

</mosaic_0001>

<bundles_post_ra>
// kernel: forward.1
= control target key start
LH: loop header
LB: loop body
LE: loop exit
PB: predicated region body
PF: predicated region fallthrough
CT: control target
= control target key end

     0   :  { %s1393_s0 = inlined_call_operand.vmem [shape: f32[8,8,32], index: 0, kind: input, shape index: {}]   ;;  %s1394_s1 = inlined_call_operand.vmem [shape: f32[32,128], index: 1, kind: input, shape index: {}]   ;;  %s1395_s2 = inlined_call_operand.vmem [shape: f32[1,32,128], index: 2, kind: input, shape index: {}]   ;;  %s1396_s3 = inlined_call_operand.vmem [shape: f32[2,32,128], index: 3, kind: input, shape index: {}]   ;;  %s1397_s4 = inlined_call_operand.vmem [shape: f32[2,1,128], index: 4, kind: input, shape index: {}]   ;;  %s1398_s5 = inlined_call_operand.vmem [shape: f32[32,16], index: 5, kind: input, shape index: {}]   ;;  %s1399_s6 = inlined_call_operand.vmem [shape: f32[1,16], index: 6, kind: input, shape index: {}]   ;;  %s1400_s7 = inlined_call_operand.hbm [shape: f32[8,8,32], index: 7, kind: output, shape index: {0}]   ;;  %s1401_s8 = inlined_call_operand.hbm [shape: f32[8,8,16], index: 8, kind: output, shape index: {1}]   ;;  %s1402_s9 = inlined_call_operand.hbm [shape: f32[2,8,32], index: 9, kind: output, shape index: {2}]   ;;  %s1403_s10 = inlined_call_operand.hbm [shape: f32[2,8,32], index: 10, kind: output, shape index: {3}]  }
   0x1   :  { %1408 = sst [smem:[#allocation15_spill]] %s1393_s0 }
   0x2   :  { %1409 = sst [smem:[#allocation16_spill]] %s1394_s1 }
   0x3   :  { %1410 = sst [smem:[#allocation17_spill]] %s1395_s2 }
   0x4   :  { %1411 = sst [smem:[#allocation18_spill]] %s1396_s3 }
   0x5   :  { %1412 = sst [smem:[#allocation19_spill]] %s1397_s4 }
   0x6   :  { %16 = vsyncpa [#allocation5], 0 }
   0x7   :  { %18 = vsyncpa [#allocation5 + $0x1], 0 }
   0x8   :  { %19 = vsyncpa [#allocation7], 0 }
   0x9   :  { %21 = vsyncpa [#allocation7 + $0x1], 0 }
   0xa   :  { %22 = vsyncpa [#allocation10], 0  ;;  %s1159_s13 = smov 0   ;;  %s1161_s14 = smov 0  }
   0xb   :  { %s1163_s15 = smov 0   ;;  %s1165_s16 = smov 0  }
   0xc LB: > { %s1180_s17 = sadd.s32 4294967295, %s1094_s16   ;;  %s1404_s18 = sadd.s32 4294967294, %s1094_s16   ;;  %s1094_s16 = sphi %s1165_s16, %s1430_s16   ;;  %s1090_s15 = sphi %s1163_s15, %s1429_s15   ;;  %s1086_s14 = sphi %s1161_s14, %s1428_s14   ;;  %s1082_s13 = sphi %s1159_s13, %s1427_s13  }
   0xd   : > { %s1184_s19 = sadd.s32 1, %s1094_s16   ;;  %s187_s20 = sadd.s32 1, %s1090_s15 }
   0xe   : > { %s184_s21 = ssub.s32 %s1094_s16, %s1184_s19  ;;  %p197_p0 = scmp.ne.s32.totalorder %s1090_s15, %s1086_s14 }
   0xf   : > { %p185_p1 = scmp.eq.s32.totalorder %s184_s21, 0  ;;  %p198_p2 = scmp.eq.s32.totalorder %s1180_s17, 7 }
  0x10   : > { %p203_p3 = scmp.ne.s32.totalorder %s1086_s14, %s1082_s13  ;;  %p204_p4 = scmp.eq.s32.totalorder %s1404_s18, 7 }
  0x11   : > { %s1197_s22 = scalar_select %p185_p1, %s1090_s15, %s187_s20  }
  0x12   : > { %p1201_p5 = por %p198_p2, %p197_p0  ;;  %p1205_p6 = por %p204_p4, %p203_p3 }
  0x13   : > { %p825_p7 = scmp.ge.s32.totalorder %s1094_s16, 1  ;;  %p315_p8 = scmp.lt.s32.totalorder %s1094_s16, 9 }
  0x15   : > { %p316_p9 = pnand %p825_p7, %p315_p8 }
  0x16   : > { %s1405_s25 = sand.u32 (!%p316_p9), 1, %s1086_s14   ;;  %p357_p10 = scmp.lt.s32.totalorder (!%p316_p9), %s1180_s17, 7 }
  0x17   : > { %319 = sbr.rel (%p316_p9) target bundleno = 1381 (0x565), region = 48  ;;  %s1215_s26 = sshll.u32 (!%p316_p9), %s1405_s25, 3 }
  0x18   : > { %s1415_s0 = sld [smem:[#allocation15_spill]] (!%p316_p9)  ;;  %p829_p11 = scmp.ne.s32.totalorder (!%p316_p9), %s1180_s17, 0 }
  0x1c   : > { %s358_s27 = scalar_select %p357_p10, %s1180_s17, 7 }
  0x1d   : > { %364 = sbr.rel (%p829_p11) target bundleno = 39 (0x27), region = 52 }
  0x1e   : > { %s828_s28 = sshll.u32 %s358_s27, 3 }
  0x1f   : > { %s360_s11 = scalar_lea.vmem %s1415_s0, %s828_s28 }
  0x22   : > { %vm365_vm0 = vcmask 261120   ;;  %v1096_v0 = vmov 0.0  }
  0x23   : > { %366 = vst.msk [vmem:[#allocation2] sm:$0xff] %vm365_vm0, %v1096_v0 }
  0x24   : > { %367 = vst.msk [vmem:[#allocation2 + $0x8] sm:$0xff] %vm365_vm0, %v1096_v0 }
  0x25   : > { %368 = vst.msk [vmem:[#allocation3] sm:$0xff] %vm365_vm0, %v1096_v0 }
  0x26   : > { %369 = vst.msk [vmem:[#allocation3 + $0x8] sm:$0xff] %vm365_vm0, %v1096_v0 }
  0x27 PF: > { %s1416_s3 = sld [smem:[#allocation18_spill]]  ;;  %vm380_vm1 = vcmask 261120   ;;  %v370_v10 = vld [vmem:[%s360_s11] sm:$0xff]  ;;  %s1406_s20 = smov 64   ;;  %vm630_vm10 = vcmask 130048  }
  0x28   : > { %s1417_s1 = sld [smem:[#allocation16_spill]]  ;;  %s1098_s11 = smov 32  }
  0x29   : > { %s1418_s4 = sld [smem:[#allocation19_spill]]  ;;  %s1420_s0 = smov 64  }
  0x2a   : > { %v375_v9 = vld [vmem:[#allocation2] sm:$0xff]  ;;  %s1419_s2 = sld [smem:[#allocation17_spill]]  ;;  %s1099_s12 = smov 96  }
  0x2b   : > { %v489_v48 = vld [vmem:[#allocation2 + $0x8] sm:$0xff]  ;;  %s1422_s18 = scalar_lea.vmem [#allocation6], %s1215_s26  ;;  %p842_p12 = scmp.ne.s32.totalorder %s1180_s17, 7 }
  0x2c   : > { %v452_v17 = vld [vmem:[#allocation3] sm:$0xff] }
  0x2d   : > { %v379_v1 = vld [vmem:[%s1416_s3 + $0x18] sm:$0xff]  ;;  %v378_v3 = vld [vmem:[%s1416_s3 + $0x10] sm:$0xff]  ;;  %v377_v5 = vld [vmem:[%s1416_s3 + $0x8] sm:$0xff] }
  0x2e   : > { %v374_v2 = vld [vmem:[%s1417_s1 + $0x18] sm:$0xff]  ;;  %396 = vmatpush.msra.mxu0 %v379_v1  ;;  %v373_v4 = vld [vmem:[%s1417_s1 + $0x10] sm:$0xff]  ;;  %v372_v6 = vld [vmem:[%s1417_s1 + $0x8] sm:$0xff] }
  0x2f   : > { %419 = vmatpush.msra.mxu1 %v374_v2  ;;  %v376_v7 = vld [vmem:[%s1416_s3] sm:$0xff]  ;;  %v836_v38 = vld [vmem:[%s1416_s3 + $0x38] sm:$0xff]  ;;  %v835_v40 = vld [vmem:[%s1416_s3 + $0x30] sm:$0xff] }
  0x30   : > { %397 = vmatpush.msra.mxu0 %v378_v3  ;;  %v371_v8 = vld [vmem:[%s1417_s1] sm:$0xff]  ;;  %v487_v39 = vld [vmem:[%s1419_s2 + $0x18] sm:$0xff]  ;;  %510 = vmatpush.msra.mxu2 %v836_v38  ;;  %v486_v41 = vld [vmem:[%s1419_s2 + $0x10] sm:$0xff] }
  0x31   : > { %420 = vmatpush.msra.mxu1 %v373_v4  ;;  %v917_v11 = vld [vmem:[%s1418_s4] ss:$0 sm:$0xff]  ;;  %532 = vmatpush.msra.mxu3 %v487_v39  ;;  %v834_v42 = vld [vmem:[%s1416_s3 + $0x28] sm:$0xff]  ;;  %v567_v49 = vld [vmem:[#allocation3 + $0x8] sm:$0xff] }
  0x32   : > { %398 = vmatpush.msra.mxu0 %v377_v5  ;;  %v485_v43 = vld [vmem:[%s1419_s2 + $0x8] sm:$0xff]  ;;  %511 = vmatpush.msra.mxu2 %v835_v40  ;;  %v833_v44 = vld [vmem:[%s1416_s3 + $0x20] sm:$0xff] }
  0x33   : > { %421 = vmatpush.msra.mxu1 %v372_v6  ;;  %533 = vmatpush.msra.mxu3 %v486_v41  ;;  %v484_v45 = vld [vmem:[%s1419_s2] sm:$0xff] }
  0x34   : > { %399 = vmatpush.msra.mxu0 %v376_v7  ;;  %512 = vmatpush.msra.mxu2 %v834_v42  ;;  %v918_v52 = vld [vmem:[%s1418_s4 + $0x1] ss:$0 sm:$0xff] }
  0x35   : > { %422 = vmatpush.msra.mxu1 %v371_v8  ;;  %830 = vmatmul.msk.f32.vlgmr.msra.gmra.mxu0 %vm380_vm1, %v375_v9 }
  0x36   : > { %831 = vmatmul.msk.f32.vlgmr.msra.gmra.mxu1 %vm380_vm1, %v370_v10  ;;  %534 = vmatpush.msra.mxu3 %v485_v43 }
  0x37   : > { %513 = vmatpush.msra.mxu2 %v833_v44 }
  0x38   : > { %535 = vmatpush.msra.mxu3 %v484_v45  ;;  %837 = vmatmul.msk.f32.vlgmr.msra.gmra.mxu2 %vm380_vm1, %v489_v48 }
  0xb2   : > { %v401_v12 = vpop.f32.mrf.mxu0 }
  0xb3   : > { %v424_v13 = vpop.f32.mrf.mxu1 }
  0xb4   : > { %v425_v14 = vadd.f32 %v424_v13, %v401_v12 }
  0xb6   : > { %v431_v15 = vadd.f32 %v917_v11, %v425_v14  ;;  %v603_v14 = vld [vmem:[%s1398_s5 + $0x18] sm:$0xff] }
  0xb7   : > { %622 = vmatpush.msrb.mxu0 %v603_v14 }
  0xb8   : > { %920 = vtanh.f32 %v431_v15  ;;  %v832_v18 = vmul.f32 -1.442695, %v431_v15  ;;  %v602_v15 = vld [vmem:[%s1398_s5 + $0x10] sm:$0xff] }
  0xb9   : > { %623 = vmatpush.msrb.mxu0 %v602_v15 }
  0xba   : > { %922 = vpow2.f32 %v832_v18 }
  0xbb   : > { %v515_v51 = vpop.f32.mrf.mxu2 }
  0xbe   : > { %v921_v16 = vpop.eup %920 }
  0xbf   : > { %459 = vrot.lane.b32.xlu0 %v921_v16, %s1406_s20  ;;  %v601_v16 = vld [vmem:[%s1398_s5 + $0x8] sm:$0xff] }
  0xc0   : > { %v923_v19 = vpop.eup %922  ;;  %624 = vmatpush.msrb.mxu0 %v601_v16 }
  0xc1   : > { %v435_v20 = vadd.f32 1.0, %v923_v19 }
  0xc3   : > { %924 = vrcp.f32 %v435_v20  ;;  %v447_v26 = vand.u32 2147483648, %v435_v20  ;;  %vm441_vm3 = vweird.f32 %v435_v20  ;;  %v445_v27 = vand.u32 2147483647, %v435_v20 }
  0xc5   : > { %v448_v29 = vor.u32 1.1754944e-38, %v447_v26  ;;  %vm446_vm5 = vcmp.eq.f32.partialorder %v445_v27, 8.507059e+37 }
  0xc7   : > { %454 = vrot.lane.b32.xlu0 %v452_v17, %s1098_s11  ;;  %v600_v17 = vld [vmem:[%s1398_s5] sm:$0xff] }
  0xc8   : > { %625 = vmatpush.msrb.mxu0 %v600_v17 }
  0xc9   : > { %v925_v21 = vpop.eup %924 }
  0xca   : > { %v437_v22 = vmul.f32 %v925_v21, %v435_v20  ;;  %vm442_vm2 = vweird.f32 %v925_v21 }
  0xcb   : > { %vm443_vm4 = vmor %vm441_vm3, %vm442_vm2 }
  0xcc   : > { %v438_v23 = vsub.f32 1.0, %v437_v22  ;;  %v919_v22 = vld [vmem:[%s1399_s6] ss:$0 sm:$0xff] }
  0xce   : > { %v439_v24 = vmul.f32 %v925_v21, %v438_v23 }
  0xcf   : > { %569 = vrot.lane.b32.xlu0 %v567_v49, %s1098_s11 }
  0xd0   : > { %v440_v25 = vadd.f32 %v925_v21, %v439_v24 }
  0xd2   : > { %v444_v28 = vsel %vm443_vm4, %v925_v21, %v440_v25 }
  0xd3   : > { %v449_v31 = vsel %vm446_vm5, %v448_v29, %v444_v28 }
 0x131   : > { %v460_v30 = vpop.permute.xlu0 %459 }
 0x132   : > { %v462_v32 = vmul.f32 %v460_v30, %v449_v31 }
 0x134   : > { %464 = vrot.lane.b32.xlu1 %v462_v32, %s1098_s11 }
 0x139   : > { %v455_v33 = vpop.permute.xlu0 %454 }
 0x13a   : > { %v457_v34 = vmul.f32 %v455_v33, %v449_v31 }
 0x141   : > { %v570_v8 = vpop.permute.xlu0 %569 }
 0x1a6   : > { %v465_v35 = vpop.permute.xlu1 %464 }
 0x1a7   : > { %v467_v36 = vadd.f32 %v465_v35, %v457_v34 }
 0x1a9   : > { %926 = vtanh.f32 %v467_v36 }
 0x1af   : > { %v927_v37 = vpop.eup %926 }
 0x1b0   : > { %470 = vrot.lane.b32.xlu1 %v927_v37, %s1406_s20 }
 0x222   : > { %v471_v46 = vpop.permute.xlu1 %470 }
 0x223   : > { %v473_v47 = vmul.f32 %v471_v46, %v449_v31 }
 0x225   : > { %475 = vrot.lane.b32.xlu2 %v473_v47, %s1098_s11 }
 0x27f   : > { %v476_v50 = vpop.permute.xlu2 %475 }
 0x280   : > { %478 = vst.msk [vmem:[#allocation2] sm:$0xff] %vm380_vm1, %v476_v50  ;;  %838 = vmatmul.msk.f32.vlgmr.msra.gmra.mxu3 %vm380_vm1, %v476_v50 }
 0x303   : > { %v537_v53 = vpop.f32.mrf.mxu3 }
 0x304   : > { %v538_v54 = vadd.f32 %v537_v53, %v515_v51 }
 0x306   : > { %v545_v55 = vadd.f32 %v918_v52, %v538_v54 }
 0x308   : > { %928 = vtanh.f32 %v545_v55  ;;  %v840_v57 = vmul.f32 -1.442695, %v545_v55 }
 0x30a   : > { %930 = vpow2.f32 %v840_v57 }
 0x30e   : > { %v929_v56 = vpop.eup %928 }
 0x30f   : > { %574 = vrot.lane.b32.xlu2 %v929_v56, %s1420_s0 }
 0x310   : > { %v931_v58 = vpop.eup %930 }
 0x311   : > { %v549_v59 = vadd.f32 1.0, %v931_v58 }
 0x313   : > { %932 = vrcp.f32 %v549_v59  ;;  %v561_v1 = vand.u32 2147483648, %v549_v59  ;;  %vm555_vm7 = vweird.f32 %v549_v59  ;;  %v559_v2 = vand.u32 2147483647, %v549_v59 }
 0x315   : > { %v562_v4 = vor.u32 1.1754944e-38, %v561_v1  ;;  %vm560_vm9 = vcmp.eq.f32.partialorder %v559_v2, 8.507059e+37 }
 0x319   : > { %v933_v60 = vpop.eup %932 }
 0x31a   : > { %v551_v61 = vmul.f32 %v933_v60, %v549_v59  ;;  %vm556_vm6 = vweird.f32 %v933_v60 }
 0x31b   : > { %vm557_vm8 = vmor %vm555_vm7, %vm556_vm6 }
 0x31c   : > { %v552_v62 = vsub.f32 1.0, %v551_v61 }
 0x31e   : > { %v553_v63 = vmul.f32 %v933_v60, %v552_v62 }
 0x320   : > { %v554_v0 = vadd.f32 %v933_v60, %v553_v63 }
 0x322   : > { %v558_v3 = vsel %vm557_vm8, %v933_v60, %v554_v0 }
 0x323   : > { %v563_v5 = vsel %vm560_vm9, %v562_v4, %v558_v3 }
 0x324   : > { %v572_v9 = vmul.f32 %v570_v8, %v563_v5 }
 0x369   : > { %v575_v6 = vpop.permute.xlu2 %574 }
 0x36a   : > { %v577_v7 = vmul.f32 %v575_v6, %v563_v5 }
 0x36c   : > { %579 = vrot.lane.b32.xlu1 %v577_v7, %s1098_s11 }
 0x374   : > { %480 = vrot.lane.b32.xlu1 %v467_v36, %s1099_s12 }
 0x3de   : > { %v580_v10 = vpop.permute.xlu1 %579 }
 0x3df   : > { %v582_v11 = vadd.f32 %v580_v10, %v572_v9 }
 0x3e1   : > { %934 = vtanh.f32 %v582_v11 }
 0x3e6   : > { %v481_v12 = vpop.permute.xlu1 %480 }
 0x3e7   : > { %v935_v13 = vpop.eup %934  ;;  %483 = vst.msk [vmem:[#allocation3] sm:$0xff] %vm380_vm1, %v481_v12 }
 0x3e8   : > { %585 = vrot.lane.b32.xlu2 %v935_v13, %s1420_s0  ;;  %s1421_s0 = scalar_lea.vmem [#allocation4], %s1215_s26 }
 0x3f0   : > { %595 = vrot.lane.b32.xlu2 %v582_v11, %s1099_s12 }
 0x442   : > { %v586_v18 = vpop.permute.xlu2 %585 }
 0x443   : > { %v588_v19 = vmul.f32 %v586_v18, %v563_v5 }
 0x445   : > { %590 = vrot.lane.b32.xlu0 %v588_v19, %s1098_s11 }
 0x44a   : > { %v596_v20 = vpop.permute.xlu2 %595 }
 0x44b   : > { %598 = vst.msk [vmem:[#allocation3 + $0x8] sm:$0xff] %vm380_vm1, %v596_v20 }
 0x4b7   : > { %v591_v21 = vpop.permute.xlu0 %590 }
 0x4b8   : > { %593 = vst.msk [vmem:[#allocation2 + $0x8] sm:$0xff] %vm380_vm1, %v591_v21  ;;  %841 = vmatmul.msk.f32.vlgmr.msrb.gmra.mxu0 %vm380_vm1, %v591_v21 }
 0x4b9   : > { %599 = vst.msk [vmem:[%s1421_s0] sm:$0xff] %vm380_vm1, %v591_v21 }
 0x534   : > { %635 = sbr.rel (%p842_p12) target bundleno = 1342 (0x53e), region = 56 }
 0x535   : > { %v627_v23 = vpop.f32.mrf.mxu0 }
 0x536   : > { %v628_v24 = vadd.f32 %v919_v22, %v627_v23 }
 0x538   : > { %631 = vst.msk [vmem:[%s1422_s18] sm:$0xff] %vm630_vm10, %v628_v24 }
 0x539   : > { %v636_v25 = vld [vmem:[#allocation2] sm:$0xff]  ;;  %v637_v26 = vld [vmem:[#allocation2 + $0x8] sm:$0xff]  ;;  %v640_v27 = vld [vmem:[#allocation3] sm:$0xff] }
 0x53a   : > { %638 = vst.msk [vmem:[#allocation8] sm:$0xff] %vm380_vm1, %v636_v25  ;;  %v641_v28 = vld [vmem:[#allocation3 + $0x8] sm:$0xff] }
 0x53b   : > { %639 = vst.msk [vmem:[#allocation8 + $0x8] sm:$0xff] %vm380_vm1, %v637_v26 }
 0x53c   : > { %642 = vst.msk [vmem:[#allocation9] sm:$0xff] %vm380_vm1, %v640_v27 }
 0x53d   : > { %643 = vst.msk [vmem:[#allocation9 + $0x8] sm:$0xff] %vm380_vm1, %v641_v28 }
 0x53e PF: > { %s649_s11 = sand.u32 1, %s1180_s17   ;;  %s845_s21 = sshll.u32 %s1180_s17, 3 }
 0x53f   : > { %s674_s28 = scalar_lea.hbm %s1401_s8, %s845_s21  ;;  %s1423_s20 = scalar_lea.vmem [#allocation6], %s1215_s26 }
 0x540   : > { %s676_s29 = sshll.u32 %s1423_s20, 4  ;;  %s678_s0 = sshll.u32 %s674_s28, 4  ;;  %s677_s29 = int_to_ptr.vmem [resolvable:$true] %s676_s29  ;;  %s679_s0 = int_to_ptr.hbm [resolvable:$true] %s678_s0 }
 0x541   : > { %s650_s12 = scalar_lea.sflag [#allocation7], %s649_s11  ;;  %s950_s30 = sshra.s32 %s679_s0, 4  ;;  %s951_s30 = int_to_ptr.hbm [resolvable:$true] %s950_s30 }
 0x542   : > { %s952_s18 = scalar_lea.hbm %s951_s30, 8  ;;  %s956_s3 = scalar_lea.hbm %s1401_s8, 64 }
 0x543   : > { %p953_p13 = scmp.ne.s32.totalorder %s951_s30, %s952_s18  ;;  %p957_p3 = scmp.lt.s32.totalorder %s951_s30, %s1401_s8 }
 0x544   : > { %p958_p4 = scmp.lt.s32.totalorder %s956_s3, %s952_s18 }
 0x545   : > { %p954_p0 = pnand %p953_p13, %p1201_p5 }
 0x546   : > { %p959_p7 = por %p958_p4, %p957_p3 }
 0x547   : > { %p955_p1 = pneg %p954_p0 }
 0x549   : > { %p960_p8 = pnand %p959_p7, %p955_p1 }
 0x54b   : > { %963 = shalt.err (!%p960_p8)
}
 0x54c   : > { %854 = dma.vmem_to_hbm [thread:$0]  (%p1201_p5), %s677_s29, 128, %s679_s0, %s650_s12  }
 0x54d   : > { %s660_s28 = scalar_lea.hbm %s1400_s7, %s845_s21  ;;  %s1424_s1 = scalar_lea.vmem [#allocation4], %s1215_s26 }
 0x54e   : > { %s662_s2 = sshll.u32 %s1424_s1, 4  ;;  %s664_s20 = sshll.u32 %s660_s28, 4  ;;  %s663_s2 = int_to_ptr.vmem [resolvable:$true] %s662_s2  ;;  %s665_s20 = int_to_ptr.hbm [resolvable:$true] %s664_s20 }
 0x54f   : > { %s1425_s4 = sand.u32 1, %s1086_s14   ;;  %s978_s30 = sshra.s32 %s665_s20, 4  ;;  %s979_s30 = int_to_ptr.hbm [resolvable:$true] %s978_s30 }
 0x550   : > { %s645_s3 = scalar_lea.sflag [#allocation5], %s1425_s4  ;;  %s980_s18 = scalar_lea.hbm %s979_s30, 8 }
 0x551   : > { %p981_p9 = scmp.ne.s32.totalorder %s979_s30, %s980_s18  ;;  %s984_s0 = scalar_lea.hbm %s1400_s7, 64 }
 0x552   : > { %p985_p12 = scmp.lt.s32.totalorder %s979_s30, %s1400_s7  ;;  %p986_p13 = scmp.lt.s32.totalorder %s984_s0, %s980_s18 }
 0x553   : > { %p982_p10 = pnand %p981_p9, %p1201_p5 }
 0x554   : > { %p987_p0 = por %p986_p13, %p985_p12 }
 0x555   : > { %p983_p11 = pneg %p982_p10 }
 0x557   : > { %p988_p1 = pnand %p987_p0, %p983_p11 }
 0x559   : > { %991 = shalt.err (!%p988_p1)
}
 0x55a   : > { %853 = dma.vmem_to_hbm [thread:$0]  (%p1201_p5), %s663_s2, 128, %s665_s20, %s645_s3  }
 0x55b   : > { %s689_s27 = sshll.u32 %s1402_s9, 4  ;;  %s1100_s28 = smov [#allocation8]   ;;  %s690_s27 = int_to_ptr.hbm [resolvable:$true] %s689_s27 }
 0x55c   : > { %s687_s1 = sshll.u32 %s1100_s28, 4  ;;  %s1101_s4 = smov 128   ;;  %s688_s1 = int_to_ptr.vmem [resolvable:$true] %s687_s1 }
 0x55d   : > { %s1102_s30 = smov 8   ;;  %s1103_s18 = smov [#allocation9]  }
 0x55e   : > { %856 = dma.vmem_to_hbm [thread:$0]  (%p198_p2), %s688_s1, 256, %s690_s27, [#allocation7], %s1101_s4, %s1101_s4, %s1102_s30  }
 0x55f   : > { %s701_s25 = sshll.u32 %s1103_s18, 4  ;;  %s703_s0 = sshll.u32 %s1403_s10, 4  ;;  %s702_s25 = int_to_ptr.vmem [resolvable:$true] %s701_s25  ;;  %s704_s0 = int_to_ptr.hbm [resolvable:$true] %s703_s0 }
 0x560   : > { %858 = dma.vmem_to_hbm [thread:$0]  (%p198_p2), %s702_s25, 256, %s704_s0, [#allocation10], %s1101_s4, %s1101_s4, %s1102_s30  }
 0x561   : > { %1065 = dma.done.wait (%p198_p2), [#allocation7], 256  }
 0x562   : > { %1067 = vsyncadd (%p198_p2), [#allocation7], 4294967040 }
 0x563   : > { %1069 = dma.done.wait (%p198_p2), [#allocation10], 256  }
 0x564   : > { %1071 = vsyncadd (%p198_p2), [#allocation10], 4294967040 }
 0x565 PF: > { %p876_p5 = scmp.ge.s32.totalorder %s1094_s16, 2  ;;  %s728_s2 = sand.u32 1, %s1082_s13  }
 0x566   : > { %s729_s20 = scalar_lea.sflag [#allocation5], %s728_s2 }
 0x567   : > { %p866_p3 = pnand %p876_p5, %p1205_p6 }
 0x569   : > { %p867_p4 = pneg %p866_p3 }
 0x56b   : > { %1073 = dma.done.wait (%p867_p4), %s729_s20, 128  }
 0x56c   : > { %1075 = vsyncadd (%p867_p4), %s729_s20, 4294967168  ;;  %s1426_s3 = sadd.s32 4294967294, %s1094_s16  }
 0x56d   : > { %s738_s12 = sand.u32 1, %s1426_s3  }
 0x56e   : > { %s739_s21 = scalar_lea.sflag [#allocation7], %s738_s12 }
 0x56f   : > { %1077 = dma.done.wait (%p867_p4), %s739_s21, 128  }
 0x570   : > { %1079 = vsyncadd (%p867_p4), %s739_s21, 4294967168  ;;  %p25_p2 = scmp.ge.s32.totalorder %s1184_s19, 10   ;;  %s1427_s13 = smov %s1086_s14 }
 0x571   : > { %s1428_s14 = smov %s1090_s15  ;;  %s1429_s15 = smov %s1197_s22 }
 0x572   : > { %s1430_s16 = smov %s1184_s19  ;;  %27 = sbr.rel (!%p25_p2) target bundleno = 12 (0xc), region = 128 }
 0x577   :  { %745 = vsyncpa [#allocation5], 1 }
 0x578   :  { %747 = vsyncpa [#allocation5 + $0x1], 1 }
 0x579   :  { %748 = vsyncpa [#allocation7], 1 }
 0x57a   :  { %750 = vsyncpa [#allocation7 + $0x1], 1 }
 0x57b   :  { %751 = vsyncpa [#allocation10], 1 }

</bundles_post_ra>
